<compile_context>
chip_gen: v7x
topology: tpu7x:2x2x1
jax: 0.10.0
libtpu: 0.0.40
codegen_flags: <defaults>
</compile_context>

<pallas_src>
import jax
import jax.numpy as jnp
from jax.experimental import pallas as pl
from jax.experimental.pallas import tpu as pltpu


def _prod(dims):
    out = 1
    for v in dims:
        out *= int(v)
    return out


# ---------------------------------------------------------------------------
# Direct HBM->HBM DMA path (wide contiguous rows)
# ---------------------------------------------------------------------------
def _build_dma_kernel(widths, offsets, row_chunks, view_ndim):
    n_in = len(widths)

    def kernel(*refs):
        in_refs = refs[:n_in]
        out_ref = refs[n_in]
        sem = refs[n_in + 1]
        copies = []
        # Start every DMA (n_in * n_chunks descriptors) before waiting on any,
        # so they all overlap on the DMA engines.
        for i, r in enumerate(in_refs):
            w = widths[i]
            o = offsets[i]
            for c, (r0, nr) in enumerate(row_chunks):
                if view_ndim == 2:
                    src = r.at[r0:r0 + nr, :]
                    dst = out_ref.at[r0:r0 + nr, o:o + w]
                else:
                    src = r.at[r0:r0 + nr, :, :]
                    dst = out_ref.at[r0:r0 + nr, o:o + w, :]
                cp = pltpu.make_async_copy(src, dst, sem.at[i, c])
                cp.start()
                copies.append(cp)
        for cp in copies:
            cp.wait()

    return kernel


def _concat_direct_dma(views, out_view, dtype, widths, offsets, pre, post,
                       target_chunk_bytes, max_chunks):
    itemsize = jnp.dtype(dtype).itemsize

    # Chunk along `pre` so each input has several outstanding DMAs (~4 MiB
    # per descriptor, capped at `max_chunks` in flight per input).
    max_row_bytes = max(w * post * itemsize for w in widths)
    rows_per_chunk = max(1, target_chunk_bytes // max_row_bytes)
    if pl.cdiv(pre, rows_per_chunk) > max_chunks:
        rows_per_chunk = pl.cdiv(pre, max_chunks)
    row_chunks = []
    r0 = 0
    while r0 < pre:
        nr = min(rows_per_chunk, pre - r0)
        row_chunks.append((r0, nr))
        r0 += nr

    kernel = _build_dma_kernel(widths, offsets, row_chunks, len(out_view))
    total_in_bytes = sum(_prod(v.shape) for v in views) * itemsize

    return pl.pallas_call(
        kernel,
        out_shape=jax.ShapeDtypeStruct(out_view, dtype),
        in_specs=[pl.BlockSpec(memory_space=pl.ANY) for _ in views],
        out_specs=pl.BlockSpec(memory_space=pl.ANY),
        scratch_shapes=[pltpu.SemaphoreType.DMA((len(views), len(row_chunks)))],
        cost_estimate=pl.CostEstimate(flops=0, transcendentals=0,
                                      bytes_accessed=2 * total_in_bytes),
    )(*views)


# ---------------------------------------------------------------------------
# VMEM-staged path (narrow contiguous rows / packed sub-word offsets)
# ---------------------------------------------------------------------------
def _build_staged_kernel(widths, offsets, view_ndim):
    n_in = len(widths)

    def kernel(*refs):
        in_refs = refs[:n_in]
        out_ref = refs[n_in]
        for i, r in enumerate(in_refs):
            w = widths[i]
            o = offsets[i]
            if view_ndim == 2:
                out_ref[:, o:o + w] = r[...]
            else:
                out_ref[:, o:o + w, :] = r[...]

    return kernel


def _concat_vmem_staged(views, out_view, dtype, widths, offsets, pre, post,
                        vmem_budget_bytes):
    itemsize = jnp.dtype(dtype).itemsize
    out_c = sum(widths)

    # Double-buffered inputs (sum_i w_i = out_c) + double-buffered output.
    bytes_per_row = 4 * out_c * post * itemsize
    tile_pre = max(1, vmem_budget_bytes // bytes_per_row)
    if tile_pre >= pre:
        tile_pre = pre                      # full extent -> no (8,128) concern
    else:
        tile_pre = max(8, (tile_pre // 8) * 8)
    grid = (pl.cdiv(pre, tile_pre),)

    if post == 1:
        in_specs = [pl.BlockSpec((tile_pre, w), lambda i: (i, 0))
                    for w in widths]
        out_spec = pl.BlockSpec((tile_pre, out_c), lambda i: (i, 0))
    else:
        in_specs = [pl.BlockSpec((tile_pre, w, post), lambda i: (i, 0, 0))
                    for w in widths]
        out_spec = pl.BlockSpec((tile_pre, out_c, post), lambda i: (i, 0, 0))

    kernel = _build_staged_kernel(widths, offsets, len(out_view))

    return pl.pallas_call(
        kernel,
        out_shape=jax.ShapeDtypeStruct(out_view, dtype),
        grid=grid,
        in_specs=in_specs,
        out_specs=out_spec,
        compiler_params=pltpu.CompilerParams(
            dimension_semantics=("parallel",)),   # v7x: shard rows over 2 TCs
    )(*views)


# ---------------------------------------------------------------------------
# Public wrapper: torch.cat(xs, dim) equivalent
# ---------------------------------------------------------------------------
def pallas_concatenate(xs, dim=-1, *,
                       min_pallas_bytes=1 << 20,
                       target_chunk_bytes=4 << 20,
                       max_chunks=8,
                       staged_run_threshold_bytes=512,
                       staged_vmem_budget_bytes=16 << 20):
    """torch.cat(xs, dim=dim) equivalent for a list/tuple of jnp arrays."""
    xs = list(xs)
    if not xs:
        raise ValueError("need at least one tensor to concatenate")

    ndim = xs[0].ndim
    axis = dim % ndim
    dtype = xs[0].dtype
    base = xs[0].shape
    for x in xs:
        if x.dtype != dtype or x.ndim != ndim:
            raise ValueError("concat inputs must share dtype and rank")
        for d in range(ndim):
            if d != axis and x.shape[d] != base[d]:
                raise ValueError("concat inputs must match on non-concat dims")

    # Drop zero-width inputs: zero-size DMAs are wasted descriptors at best
    # and a lowering edge case at worst.
    nonzero = [x for x in xs if x.shape[axis] > 0]
    if len(nonzero) == 0:
        return jnp.concatenate(xs, axis=axis)
    if len(nonzero) == 1:
        return nonzero[0]
    xs = nonzero

    itemsize = jnp.dtype(dtype).itemsize
    total_bytes = sum(_prod(x.shape) for x in xs) * itemsize

    pre = _prod(base[:axis])
    post = _prod(base[axis + 1:])
    widths = [int(x.shape[axis]) for x in xs]
    out_c = sum(widths)
    out_shape = base[:axis] + (out_c,) + base[axis + 1:]

    if pre == 0 or post == 0 or total_bytes < min_pallas_bytes:
        # Degenerate or tiny: let XLA handle (and possibly fuse/elide) it.
        return jnp.concatenate(xs, axis=axis)

    offsets = []
    o = 0
    for w in widths:
        offsets.append(o)
        o += w

    # Canonical (pre, C[, post]) views; free for default row-major layouts.
    if post == 1:
        views = [x.reshape(pre, w) for x, w in zip(xs, widths)]
        out_view = (pre, out_c)
    else:
        views = [x.reshape(pre, w, post) for x, w in zip(xs, widths)]
        out_view = (pre, out_c, post)

    # --- Path selection --------------------------------------------------
    min_run_bytes = min(w * post * itemsize for w in widths)
    subword = itemsize < 4 and any(
        (w * post * itemsize) % 4 != 0 or (off * post * itemsize) % 4 != 0
        for w, off in zip(widths, offsets))
    staged_ok = (4 * out_c * post * itemsize) * min(8, pre) <= staged_vmem_budget_bytes

    if (min_run_bytes < staged_run_threshold_bytes or subword) and staged_ok:
        out = _concat_vmem_staged(views, out_view, dtype, widths, offsets,
                                  pre, post, staged_vmem_budget_bytes)
    elif subword:
        # Sub-word packed offsets that don't fit the staged budget: stay safe.
        return jnp.concatenate(xs, axis=axis)
    else:
        out = _concat_direct_dma(views, out_view, dtype, widths, offsets,
                                 pre, post, target_chunk_bytes, max_chunks)

    return out.reshape(out_shape)


if __name__ == "__main__":
    key = jax.random.PRNGKey(0)
    k1, k2, k3, k4, k5, k6, k7 = jax.random.split(key, 7)

    # Case 1: last-axis concat (dim=-1), narrow widths -> VMEM-staged path.
    a = jax.random.normal(k1, (2, 4, 16, 16), dtype=jnp.float32)
    b = jax.random.normal(k2, (2, 4, 16, 8), dtype=jnp.float32)
    c = jax.random.normal(k3, (2, 4, 16, 4), dtype=jnp.float32)
    out1 = jax.block_until_ready(
        pallas_concatenate([a, b, c], dim=-1, min_pallas_bytes=0))
    ref1 = jnp.concatenate([a, b, c], axis=-1)
    assert out1.shape == ref1.shape and out1.dtype == ref1.dtype
    assert bool(jnp.all(out1 == ref1))

    # Case 2: channel concat (dim=1), wide contiguous rows -> direct HBM->HBM
    # DMA path; small target_chunk_bytes forces the multi-chunk DMA code path.
    d = jax.random.normal(k4, (2, 4, 16, 16), dtype=jnp.float32)
    e = jax.random.normal(k5, (2, 3, 16, 16), dtype=jnp.float32)
    out2 = jax.block_until_ready(
        pallas_concatenate([d, e], dim=1, min_pallas_bytes=0,
                           target_chunk_bytes=2048))
    ref2 = jnp.concatenate([d, e], axis=1)
    assert out2.shape == ref2.shape and out2.dtype == ref2.dtype
    assert bool(jnp.all(out2 == ref2))

    # Case 3: bf16 last-axis concat with non-packing-aligned widths/offsets ->
    # staged path (avoids sub-word HBM DMA slices for packed dtypes).
    f = jax.random.normal(k6, (2, 4, 8, 5), dtype=jnp.bfloat16)
    g = jax.random.normal(k7, (2, 4, 8, 3), dtype=jnp.bfloat16)
    out3 = jax.block_until_ready(
        pallas_concatenate([f, g], dim=-1, min_pallas_bytes=0))
    ref3 = jnp.concatenate([f, g], axis=-1)
    assert out3.shape == ref3.shape and out3.dtype == ref3.dtype
    assert bool(jnp.all(out3 == ref3))

    print("KERNEL_OK")
</pallas_src>

<mosaic_0001>
module attributes {stable_mosaic.version = 11 : i64} {
  func.func @kernel(%arg0: i32, %arg1: memref<128x16xf32, #tpu.memory_space<vmem>>, %arg2: memref<128x8xf32, #tpu.memory_space<vmem>>, %arg3: memref<128x4xf32, #tpu.memory_space<vmem>>, %arg4: memref<128x28xf32, #tpu.memory_space<vmem>>) attributes {dimension_semantics = [#tpu.dimension_semantics<parallel>], iteration_bounds = array<i64: 1>, scalar_prefetch = 0 : i64, scratch_operands = 0 : i64, tpu.core_type = #tpu.core_type<tc>, window_params = [{transform_indices = @transform_0, window_bounds = array<i64: 128, 16>}, {transform_indices = @transform_1, window_bounds = array<i64: 128, 8>}, {transform_indices = @transform_2, window_bounds = array<i64: 128, 4>}, {transform_indices = @transform_3, window_bounds = array<i64: 128, 28>}]} {
    %c0 = arith.constant 0 : index
    %c0_0 = arith.constant 0 : index
    %0 = vector.load %arg1[%c0, %c0_0] : memref<128x16xf32, #tpu.memory_space<vmem>>, vector<128x16xf32>
    %c0_1 = arith.constant 0 : index
    %c0_2 = arith.constant 0 : index
    %1 = vector.load %arg4[%c0_1, %c0_2] : memref<128x28xf32, #tpu.memory_space<vmem>>, vector<128x16xf32>
    tpu.vector_store %arg4[%c0_1, %c0_2], %0 {strides = array<i32>} : memref<128x28xf32, #tpu.memory_space<vmem>>, vector<128x16xf32>,
    %c0_3 = arith.constant 0 : index
    %c0_4 = arith.constant 0 : index
    %2 = vector.load %arg2[%c0_3, %c0_4] : memref<128x8xf32, #tpu.memory_space<vmem>>, vector<128x8xf32>
    %c0_5 = arith.constant 0 : index
    %c16 = arith.constant 16 : index
    %3 = vector.load %arg4[%c0_5, %c16] : memref<128x28xf32, #tpu.memory_space<vmem>>, vector<128x8xf32>
    tpu.vector_store %arg4[%c0_5, %c16], %2 {strides = array<i32>} : memref<128x28xf32, #tpu.memory_space<vmem>>, vector<128x8xf32>,
    %c0_6 = arith.constant 0 : index
    %c0_7 = arith.constant 0 : index
    %4 = vector.load %arg3[%c0_6, %c0_7] : memref<128x4xf32, #tpu.memory_space<vmem>>, vector<128x4xf32>
    %c0_8 = arith.constant 0 : index
    %c24 = arith.constant 24 : index
    %5 = vector.load %arg4[%c0_8, %c24] : memref<128x28xf32, #tpu.memory_space<vmem>>, vector<128x4xf32>
    tpu.vector_store %arg4[%c0_8, %c24], %4 {strides = array<i32>} : memref<128x28xf32, #tpu.memory_space<vmem>>, vector<128x4xf32>,
    return
  }
  func.func @transform_0(%arg0: i32) -> (i32, i32) {
    %c0_i32 = arith.constant 0 : i32
    %c0_i32_0 = arith.constant 0 : i32
    return %arg0, %c0_i32 : i32, i32
  }
  func.func @transform_1(%arg0: i32) -> (i32, i32) {
    %c0_i32 = arith.constant 0 : i32
    %c0_i32_0 = arith.constant 0 : i32
    return %arg0, %c0_i32 : i32, i32
  }
  func.func @transform_2(%arg0: i32) -> (i32, i32) {
    %c0_i32 = arith.constant 0 : i32
    %c0_i32_0 = arith.constant 0 : i32
    return %arg0, %c0_i32 : i32, i32
  }
  func.func @transform_3(%arg0: i32) -> (i32, i32) {
    %c0_i32 = arith.constant 0 : i32
    %c0_i32_0 = arith.constant 0 : i32
    return %arg0, %c0_i32 : i32, i32
  }
}

</mosaic_0001>

<bundles_post_ra>
// kernel: tpu_custom_call.1
= control target key start
LH: loop header
LB: loop body
LE: loop exit
PB: predicated region body
PF: predicated region fallthrough
CT: control target
= control target key end

     0   :  { %s247_s16 = smov 16   ;;  %vm30_vm0 = vcmask 130048   ;;  %s248_s7 = smov 24   ;;  %vm127_vm1 = vcmask 195712   ;;  %vm224_vm2 = vcmask 228544   ;;  %s621_s1 = inlined_call_operand.vmem [shape: f32[128,8], index: 1, kind: input, shape index: {}]   ;;  %s622_s0 = inlined_call_operand.vmem [shape: f32[128,16], index: 0, kind: input, shape index: {}]   ;;  %s623_s3 = inlined_call_operand.vmem [shape: f32[128,28], index: 3, kind: output, shape index: {}]   ;;  %s624_s2 = inlined_call_operand.vmem [shape: f32[128,4], index: 2, kind: input, shape index: {}]  }
   0x1   :  { %v49_v0 = vld [vmem:[%s621_s1 + $0x10] sm:$0xff]  ;;  %v47_v1 = vld [vmem:[%s621_s1] sm:$0xff]  ;;  %v50_v2 = vld [vmem:[%s621_s1 + $0x18] sm:$0xff] }
   0x2   :  { %83 = vrot.lane.b32.xlu1 %v49_v0, %s247_s16  ;;  %79 = vrot.lane.b32.xlu0 %v47_v1, %s247_s16  ;;  %v48_v3 = vld [vmem:[%s621_s1 + $0x8] sm:$0xff]  ;;  %v51_v5 = vld [vmem:[%s621_s1 + $0x20] sm:$0xff] }
   0x3   :  { %v52_v4 = vld [vmem:[%s621_s1 + $0x28] sm:$0xff]  ;;  %v54_v6 = vld [vmem:[%s621_s1 + $0x38] sm:$0xff]  ;;  %v53_v7 = vld [vmem:[%s621_s1 + $0x30] sm:$0xff] }
   0x4   :  { %v16_v8 = vld [vmem:[%s622_s0 + $0x10] sm:$0xff]  ;;  %v56_v9 = vld [vmem:[%s621_s1 + $0x48] sm:$0xff]  ;;  %v55_v10 = vld [vmem:[%s621_s1 + $0x40] sm:$0xff] }
   0x5   :  { %33 = vst.msk [vmem:[%s623_s3 + $0x10] sm:$0xff] %vm30_vm0, %v16_v8  ;;  %v14_v11 = vld [vmem:[%s622_s0] sm:$0xff]  ;;  %v17_v12 = vld [vmem:[%s622_s0 + $0x18] sm:$0xff]  ;;  %v15_v13 = vld [vmem:[%s622_s0 + $0x8] sm:$0xff] }
   0x6   :  { %85 = vrot.lane.b32.xlu1 %v50_v2, %s247_s16  ;;  %81 = vrot.lane.b32.xlu0 %v48_v3, %s247_s16  ;;  %31 = vst.msk [vmem:[%s623_s3] sm:$0xff] %vm30_vm0, %v14_v11  ;;  %34 = vst.msk [vmem:[%s623_s3 + $0x18] sm:$0xff] %vm30_vm0, %v17_v12 }
   0x7   :  { %32 = vst.msk [vmem:[%s623_s3 + $0x8] sm:$0xff] %vm30_vm0, %v15_v13  ;;  %v19_v14 = vld [vmem:[%s622_s0 + $0x28] sm:$0xff]  ;;  %v18_v15 = vld [vmem:[%s622_s0 + $0x20] sm:$0xff]  ;;  %v21_v16 = vld [vmem:[%s622_s0 + $0x38] sm:$0xff] }
   0x8   :  { %36 = vst.msk [vmem:[%s623_s3 + $0x28] sm:$0xff] %vm30_vm0, %v19_v14  ;;  %35 = vst.msk [vmem:[%s623_s3 + $0x20] sm:$0xff] %vm30_vm0, %v18_v15  ;;  %v20_v17 = vld [vmem:[%s622_s0 + $0x30] sm:$0xff]  ;;  %v23_v18 = vld [vmem:[%s622_s0 + $0x48] sm:$0xff] }
   0x9   :  { %38 = vst.msk [vmem:[%s623_s3 + $0x38] sm:$0xff] %vm30_vm0, %v21_v16  ;;  %37 = vst.msk [vmem:[%s623_s3 + $0x30] sm:$0xff] %vm30_vm0, %v20_v17  ;;  %v22_v19 = vld [vmem:[%s622_s0 + $0x40] sm:$0xff]  ;;  %v25_v20 = vld [vmem:[%s622_s0 + $0x58] sm:$0xff] }
   0xa   :  { %89 = vrot.lane.b32.xlu1 %v52_v4, %s247_s16  ;;  %87 = vrot.lane.b32.xlu0 %v51_v5, %s247_s16  ;;  %40 = vst.msk [vmem:[%s623_s3 + $0x48] sm:$0xff] %vm30_vm0, %v23_v18  ;;  %v24_v21 = vld [vmem:[%s622_s0 + $0x50] sm:$0xff] }
   0xb   :  { %39 = vst.msk [vmem:[%s623_s3 + $0x40] sm:$0xff] %vm30_vm0, %v22_v19  ;;  %42 = vst.msk [vmem:[%s623_s3 + $0x58] sm:$0xff] %vm30_vm0, %v25_v20  ;;  %v27_v22 = vld [vmem:[%s622_s0 + $0x68] sm:$0xff]  ;;  %v26_v23 = vld [vmem:[%s622_s0 + $0x60] sm:$0xff] }
   0xc   :  { %41 = vst.msk [vmem:[%s623_s3 + $0x50] sm:$0xff] %vm30_vm0, %v24_v21  ;;  %v29_v24 = vld [vmem:[%s622_s0 + $0x78] sm:$0xff]  ;;  %44 = vst.msk [vmem:[%s623_s3 + $0x68] sm:$0xff] %vm30_vm0, %v27_v22  ;;  %v28_v25 = vld [vmem:[%s622_s0 + $0x70] sm:$0xff] }
   0xd   :  { %43 = vst.msk [vmem:[%s623_s3 + $0x60] sm:$0xff] %vm30_vm0, %v26_v23  ;;  %46 = vst.msk [vmem:[%s623_s3 + $0x78] sm:$0xff] %vm30_vm0, %v29_v24  ;;  %v58_v26 = vld [vmem:[%s621_s1 + $0x58] sm:$0xff]  ;;  %v57_v27 = vld [vmem:[%s621_s1 + $0x50] sm:$0xff] }
   0xe   :  { %93 = vrot.lane.b32.xlu1 %v54_v6, %s247_s16  ;;  %91 = vrot.lane.b32.xlu0 %v53_v7, %s247_s16  ;;  %45 = vst.msk [vmem:[%s623_s3 + $0x70] sm:$0xff] %vm30_vm0, %v28_v25  ;;  %v60_v28 = vld [vmem:[%s621_s1 + $0x68] sm:$0xff] }
   0xf   :  { %v59_v29 = vld [vmem:[%s621_s1 + $0x60] sm:$0xff]  ;;  %v62_v30 = vld [vmem:[%s621_s1 + $0x78] sm:$0xff]  ;;  %v61_v31 = vld [vmem:[%s621_s1 + $0x70] sm:$0xff] }
  0x10   :  { %v145_v32 = vld [vmem:[%s624_s2 + $0x8] sm:$0xff]  ;;  %v144_v33 = vld [vmem:[%s624_s2] sm:$0xff]  ;;  %v147_v34 = vld [vmem:[%s624_s2 + $0x18] sm:$0xff] }
  0x11   :  { %v146_v35 = vld [vmem:[%s624_s2 + $0x10] sm:$0xff]  ;;  %v149_v36 = vld [vmem:[%s624_s2 + $0x28] sm:$0xff]  ;;  %v148_v37 = vld [vmem:[%s624_s2 + $0x20] sm:$0xff] }
  0x12   :  { %97 = vrot.lane.b32.xlu1 %v56_v9, %s247_s16  ;;  %95 = vrot.lane.b32.xlu0 %v55_v10, %s247_s16  ;;  %v151_v38 = vld [vmem:[%s624_s2 + $0x38] sm:$0xff]  ;;  %v150_v39 = vld [vmem:[%s624_s2 + $0x30] sm:$0xff] }
  0x13   :  { %v153_v40 = vld [vmem:[%s624_s2 + $0x48] sm:$0xff]  ;;  %v152_v41 = vld [vmem:[%s624_s2 + $0x40] sm:$0xff]  ;;  %v155_v42 = vld [vmem:[%s624_s2 + $0x58] sm:$0xff] }
  0x14   :  { %v154_v43 = vld [vmem:[%s624_s2 + $0x50] sm:$0xff]  ;;  %v157_v44 = vld [vmem:[%s624_s2 + $0x68] sm:$0xff]  ;;  %v156_v45 = vld [vmem:[%s624_s2 + $0x60] sm:$0xff] }
  0x15   :  { %v159_v46 = vld [vmem:[%s624_s2 + $0x78] sm:$0xff]  ;;  %v158_v47 = vld [vmem:[%s624_s2 + $0x70] sm:$0xff] }
  0x16   :  { %101 = vrot.lane.b32.xlu1 %v58_v26, %s247_s16  ;;  %99 = vrot.lane.b32.xlu0 %v57_v27, %s247_s16 }
  0x1a   :  { %105 = vrot.lane.b32.xlu1 %v60_v28, %s247_s16  ;;  %103 = vrot.lane.b32.xlu0 %v59_v29, %s247_s16 }
  0x1e   :  { %109 = vrot.lane.b32.xlu1 %v62_v30, %s247_s16  ;;  %107 = vrot.lane.b32.xlu0 %v61_v31, %s247_s16 }
  0x22   :  { %178 = vrot.lane.b32.xlu1 %v145_v32, %s248_s7  ;;  %176 = vrot.lane.b32.xlu0 %v144_v33, %s248_s7 }
  0x26   :  { %182 = vrot.lane.b32.xlu1 %v147_v34, %s248_s7  ;;  %180 = vrot.lane.b32.xlu0 %v146_v35, %s248_s7 }
  0x2a   :  { %186 = vrot.lane.b32.xlu1 %v149_v36, %s248_s7  ;;  %184 = vrot.lane.b32.xlu0 %v148_v37, %s248_s7 }
  0x2e   :  { %190 = vrot.lane.b32.xlu1 %v151_v38, %s248_s7  ;;  %188 = vrot.lane.b32.xlu0 %v150_v39, %s248_s7 }
  0x32   :  { %194 = vrot.lane.b32.xlu1 %v153_v40, %s248_s7  ;;  %192 = vrot.lane.b32.xlu0 %v152_v41, %s248_s7 }
  0x36   :  { %198 = vrot.lane.b32.xlu1 %v155_v42, %s248_s7  ;;  %196 = vrot.lane.b32.xlu0 %v154_v43, %s248_s7 }
  0x3a   :  { %202 = vrot.lane.b32.xlu1 %v157_v44, %s248_s7  ;;  %200 = vrot.lane.b32.xlu0 %v156_v45, %s248_s7 }
  0x3e   :  { %206 = vrot.lane.b32.xlu1 %v159_v46, %s248_s7  ;;  %204 = vrot.lane.b32.xlu0 %v158_v47, %s248_s7 }
  0x74   :  { %v84_v48 = vpop.permute.xlu1 %83  ;;  %v80_v49 = vpop.permute.xlu0 %79 }
  0x75   :  { %130 = vst.msk [vmem:[%s623_s3 + $0x10] sm:$0xff] %vm127_vm1, %v84_v48  ;;  %128 = vst.msk [vmem:[%s623_s3] sm:$0xff] %vm127_vm1, %v80_v49 }
  0x78   :  { %v86_v50 = vpop.permute.xlu1 %85  ;;  %v82_v51 = vpop.permute.xlu0 %81 }
  0x79   :  { %131 = vst.msk [vmem:[%s623_s3 + $0x18] sm:$0xff] %vm127_vm1, %v86_v50  ;;  %129 = vst.msk [vmem:[%s623_s3 + $0x8] sm:$0xff] %vm127_vm1, %v82_v51 }
  0x7c   :  { %v90_v52 = vpop.permute.xlu1 %89  ;;  %v88_v53 = vpop.permute.xlu0 %87 }
  0x7d   :  { %133 = vst.msk [vmem:[%s623_s3 + $0x28] sm:$0xff] %vm127_vm1, %v90_v52  ;;  %132 = vst.msk [vmem:[%s623_s3 + $0x20] sm:$0xff] %vm127_vm1, %v88_v53 }
  0x80   :  { %v94_v54 = vpop.permute.xlu1 %93  ;;  %v92_v55 = vpop.permute.xlu0 %91 }
  0x81   :  { %135 = vst.msk [vmem:[%s623_s3 + $0x38] sm:$0xff] %vm127_vm1, %v94_v54  ;;  %134 = vst.msk [vmem:[%s623_s3 + $0x30] sm:$0xff] %vm127_vm1, %v92_v55 }
  0x84   :  { %v98_v56 = vpop.permute.xlu1 %97  ;;  %v96_v57 = vpop.permute.xlu0 %95 }
  0x85   :  { %137 = vst.msk [vmem:[%s623_s3 + $0x48] sm:$0xff] %vm127_vm1, %v98_v56  ;;  %136 = vst.msk [vmem:[%s623_s3 + $0x40] sm:$0xff] %vm127_vm1, %v96_v57 }
  0x88   :  { %v102_v58 = vpop.permute.xlu1 %101  ;;  %v100_v59 = vpop.permute.xlu0 %99 }
  0x89   :  { %139 = vst.msk [vmem:[%s623_s3 + $0x58] sm:$0xff] %vm127_vm1, %v102_v58  ;;  %138 = vst.msk [vmem:[%s623_s3 + $0x50] sm:$0xff] %vm127_vm1, %v100_v59 }
  0x8c   :  { %v106_v60 = vpop.permute.xlu1 %105  ;;  %v104_v61 = vpop.permute.xlu0 %103 }
  0x8d   :  { %141 = vst.msk [vmem:[%s623_s3 + $0x68] sm:$0xff] %vm127_vm1, %v106_v60  ;;  %140 = vst.msk [vmem:[%s623_s3 + $0x60] sm:$0xff] %vm127_vm1, %v104_v61 }
  0x90   :  { %v110_v62 = vpop.permute.xlu1 %109  ;;  %v108_v63 = vpop.permute.xlu0 %107 }
  0x91   :  { %143 = vst.msk [vmem:[%s623_s3 + $0x78] sm:$0xff] %vm127_vm1, %v110_v62  ;;  %142 = vst.msk [vmem:[%s623_s3 + $0x70] sm:$0xff] %vm127_vm1, %v108_v63 }
  0x94   :  { %v179_v0 = vpop.permute.xlu1 %178  ;;  %v177_v1 = vpop.permute.xlu0 %176 }
  0x95   :  { %226 = vst.msk [vmem:[%s623_s3 + $0x8] sm:$0xff] %vm224_vm2, %v179_v0  ;;  %225 = vst.msk [vmem:[%s623_s3] sm:$0xff] %vm224_vm2, %v177_v1 }
  0x98   :  { %v183_v2 = vpop.permute.xlu1 %182  ;;  %v181_v3 = vpop.permute.xlu0 %180 }
  0x99   :  { %228 = vst.msk [vmem:[%s623_s3 + $0x18] sm:$0xff] %vm224_vm2, %v183_v2  ;;  %227 = vst.msk [vmem:[%s623_s3 + $0x10] sm:$0xff] %vm224_vm2, %v181_v3 }
  0x9c   :  { %v187_v4 = vpop.permute.xlu1 %186  ;;  %v185_v5 = vpop.permute.xlu0 %184 }
  0x9d   :  { %230 = vst.msk [vmem:[%s623_s3 + $0x28] sm:$0xff] %vm224_vm2, %v187_v4  ;;  %229 = vst.msk [vmem:[%s623_s3 + $0x20] sm:$0xff] %vm224_vm2, %v185_v5 }
  0xa0   :  { %v191_v6 = vpop.permute.xlu1 %190  ;;  %v189_v7 = vpop.permute.xlu0 %188 }
  0xa1   :  { %232 = vst.msk [vmem:[%s623_s3 + $0x38] sm:$0xff] %vm224_vm2, %v191_v6  ;;  %231 = vst.msk [vmem:[%s623_s3 + $0x30] sm:$0xff] %vm224_vm2, %v189_v7 }
  0xa4   :  { %v195_v8 = vpop.permute.xlu1 %194  ;;  %v193_v9 = vpop.permute.xlu0 %192 }
  0xa5   :  { %234 = vst.msk [vmem:[%s623_s3 + $0x48] sm:$0xff] %vm224_vm2, %v195_v8  ;;  %233 = vst.msk [vmem:[%s623_s3 + $0x40] sm:$0xff] %vm224_vm2, %v193_v9 }
  0xa8   :  { %v199_v10 = vpop.permute.xlu1 %198  ;;  %v197_v11 = vpop.permute.xlu0 %196 }
  0xa9   :  { %236 = vst.msk [vmem:[%s623_s3 + $0x58] sm:$0xff] %vm224_vm2, %v199_v10  ;;  %235 = vst.msk [vmem:[%s623_s3 + $0x50] sm:$0xff] %vm224_vm2, %v197_v11 }
  0xac   :  { %v203_v12 = vpop.permute.xlu1 %202  ;;  %v201_v13 = vpop.permute.xlu0 %200 }
  0xad   :  { %238 = vst.msk [vmem:[%s623_s3 + $0x68] sm:$0xff] %vm224_vm2, %v203_v12  ;;  %237 = vst.msk [vmem:[%s623_s3 + $0x60] sm:$0xff] %vm224_vm2, %v201_v13 }
  0xb0   :  { %v207_v14 = vpop.permute.xlu1 %206  ;;  %v205_v15 = vpop.permute.xlu0 %204 }
  0xb1   :  { %240 = vst.msk [vmem:[%s623_s3 + $0x78] sm:$0xff] %vm224_vm2, %v207_v14  ;;  %239 = vst.msk [vmem:[%s623_s3 + $0x70] sm:$0xff] %vm224_vm2, %v205_v15 }

</bundles_post_ra>
